<compile_context>
chip_gen: v6e
topology: v6e:2x2x1
jax: 0.10.0
libtpu: 0.0.40
codegen_flags: <defaults>
</compile_context>

<pallas_src>
import jax
import jax.numpy as jnp
from jax.experimental import pallas as pl
from jax.experimental.pallas import tpu as pltpu

IN_DIM = 26
H1 = 64
H2 = 128
LATENT = 5
OUT_PAD = 128  # lane-dense output width


def vae_kernel(x_ref, eps_ref,
               w1_ref, b1_ref, w2_ref, b2_ref,
               wst_ref, bst_ref,
               w3_ref, b3_ref, w4_ref, b4_ref, w5_ref, b5_ref,
               stats_ref, recon_ref):
    x = x_ref[...]

    # ---- encode ----
    h1 = jnp.maximum(
        jnp.dot(x, w1_ref[...], preferred_element_type=jnp.float32) + b1_ref[...], 0.0)
    h2 = jnp.maximum(
        jnp.dot(h1, w2_ref[...], preferred_element_type=jnp.float32) + b2_ref[...], 0.0)

    # fused fc21+fc22 (zero-padded to 128 lanes): cols [0:5]=mu, [5:10]=logvar, rest 0
    stats = jnp.dot(h2, wst_ref[...], preferred_element_type=jnp.float32) + bst_ref[...]
    stats_ref[...] = stats  # lane-dense (tb, 128) store

    mu = stats[:, :LATENT]
    logvar = stats[:, LATENT:2 * LATENT]

    # ---- reparameterize: z = eps * exp(0.5*logvar) + mu  (exp rides the EUP slot) ----
    z = eps_ref[...] * jnp.exp(0.5 * logvar) + mu

    # ---- decode ----
    h3 = jnp.maximum(
        jnp.dot(z, w3_ref[...], preferred_element_type=jnp.float32) + b3_ref[...], 0.0)
    h4 = jnp.maximum(
        jnp.dot(h3, w4_ref[...], preferred_element_type=jnp.float32) + b4_ref[...], 0.0)
    recon = jnp.dot(h4, w5_ref[...], preferred_element_type=jnp.float32) + b5_ref[...]
    recon_ref[...] = jnp.maximum(recon, 0.0)  # lane-dense (tb, 128) store


def make_params(key):
    """Deterministic synthetic parameters. Weights as (in, out), biases as (1, out)."""
    dims = [
        ("fc1", IN_DIM, H1),
        ("fc2", H1, H2),
        ("fc21", H2, LATENT),
        ("fc22", H2, LATENT),
        ("fc3", LATENT, H2),
        ("fc4", H2, H1),
        ("fc5", H1, IN_DIM),
    ]
    params = []
    for i, (_, din, dout) in enumerate(dims):
        kw, kb = jax.random.split(jax.random.fold_in(key, i))
        scale = 1.0 / jnp.sqrt(jnp.float32(din))
        w = jax.random.uniform(kw, (din, dout), jnp.float32, -scale, scale)
        b = jax.random.uniform(kb, (1, dout), jnp.float32, -scale, scale)
        params.append(w)
        params.append(b)
    return params  # [w1,b1,w2,b2,w21,b21,w22,b22,w3,b3,w4,b4,w5,b5]


def pack_params(params):
    """Fuse fc21/fc22 into one lane-padded matmul and lane-pad fc5 for dense stores."""
    w1, b1, w2, b2, w21, b21, w22, b22, w3, b3, w4, b4, w5, b5 = params
    wst = (jnp.zeros((H2, OUT_PAD), jnp.float32)
           .at[:, :LATENT].set(w21)
           .at[:, LATENT:2 * LATENT].set(w22))
    bst = (jnp.zeros((1, OUT_PAD), jnp.float32)
           .at[:, :LATENT].set(b21)
           .at[:, LATENT:2 * LATENT].set(b22))
    w5p = jnp.zeros((H1, OUT_PAD), jnp.float32).at[:, :IN_DIM].set(w5)
    b5p = jnp.zeros((1, OUT_PAD), jnp.float32).at[:, :IN_DIM].set(b5)
    return [w1, b1, w2, b2, wst, bst, w3, b3, w4, b4, w5p, b5p]


def _round_up(n, m):
    return ((n + m - 1) // m) * m


def vae_forward(x, eps, params, *, tile_b=256):
    """x: (B, 26) float32; eps: (B, 5) float32 standard-normal noise.

    Returns (reconstruction (B,26), mu (B,5), logvar (B,5)).
    """
    B = x.shape[0]
    packed = pack_params(params)

    # Batch tile: large (default 256) for real batches, shrinks for tiny demo batches.
    tb = min(tile_b, _round_up(B, 8))
    Bp = _round_up(B, tb)
    if Bp != B:
        x = jnp.pad(x, ((0, Bp - B), (0, 0)))
        eps = jnp.pad(eps, ((0, Bp - B), (0, 0)))
    grid = (Bp // tb,)

    in_specs = [
        pl.BlockSpec((tb, IN_DIM), lambda i: (i, 0)),   # x tile
        pl.BlockSpec((tb, LATENT), lambda i: (i, 0)),   # eps tile
    ] + [
        # Full-array weight/bias blocks with constant index maps: resident across grid.
        pl.BlockSpec(p.shape, lambda i: (0, 0)) for p in packed
    ]

    out_specs = (
        pl.BlockSpec((tb, OUT_PAD), lambda i: (i, 0)),  # stats = [mu | logvar | 0...]
        pl.BlockSpec((tb, OUT_PAD), lambda i: (i, 0)),  # padded reconstruction
    )
    out_shape = (
        jax.ShapeDtypeStruct((Bp, OUT_PAD), jnp.float32),
        jax.ShapeDtypeStruct((Bp, OUT_PAD), jnp.float32),
    )

    stats, recon = pl.pallas_call(
        vae_kernel,
        out_shape=out_shape,
        grid=grid,
        in_specs=in_specs,
        out_specs=out_specs,
        compiler_params=pltpu.CompilerParams(
            dimension_semantics=("parallel",)),  # shards batch tiles across v7x's 2 TCs
    )(x, eps, *packed)

    recon = recon[:B, :IN_DIM]
    mu = stats[:B, :LATENT]
    logvar = stats[:B, LATENT:2 * LATENT]
    return recon, mu, logvar


if __name__ == "__main__":
    key = jax.random.PRNGKey(0)
    k_x, k_eps, k_p = jax.random.split(key, 3)

    B = 8
    x = jax.random.normal(k_x, (B, IN_DIM), jnp.float32)
    # torch.randn_like(std) equivalent: standard normal noise, generated outside the kernel
    eps = jax.random.normal(k_eps, (B, LATENT), jnp.float32)
    params = make_params(k_p)

    recon, mu, logvar = vae_forward(x, eps, params)
    jax.block_until_ready((recon, mu, logvar))

    # quick sanity check against a pure-JAX reference
    def ref(x, eps, p):
        w1, b1, w2, b2, w21, b21, w22, b22, w3, b3, w4, b4, w5, b5 = p
        h1 = jnp.maximum(x @ w1 + b1, 0.0)
        h2 = jnp.maximum(h1 @ w2 + b2, 0.0)
        mu = h2 @ w21 + b21
        lv = h2 @ w22 + b22
        z = eps * jnp.exp(0.5 * lv) + mu
        h3 = jnp.maximum(z @ w3 + b3, 0.0)
        h4 = jnp.maximum(h3 @ w4 + b4, 0.0)
        return jnp.maximum(h4 @ w5 + b5, 0.0), mu, lv

    r_ref, mu_ref_, lv_ref = ref(x, eps, params)
    assert jnp.allclose(recon, r_ref, atol=1e-5)
    assert jnp.allclose(mu, mu_ref_, atol=1e-5)
    assert jnp.allclose(logvar, lv_ref, atol=1e-5)

    print("KERNEL_OK")
</pallas_src>

<mosaic_0001>
module attributes {stable_mosaic.version = 11 : i64} {
  func.func @vae_kernel(%arg0: i32, %arg1: memref<8x26xf32, #tpu.memory_space<vmem>>, %arg2: memref<8x5xf32, #tpu.memory_space<vmem>>, %arg3: memref<26x64xf32, #tpu.memory_space<vmem>>, %arg4: memref<1x64xf32, #tpu.memory_space<vmem>>, %arg5: memref<64x128xf32, #tpu.memory_space<vmem>>, %arg6: memref<1x128xf32, #tpu.memory_space<vmem>>, %arg7: memref<128x128xf32, #tpu.memory_space<vmem>>, %arg8: memref<1x128xf32, #tpu.memory_space<vmem>>, %arg9: memref<5x128xf32, #tpu.memory_space<vmem>>, %arg10: memref<1x128xf32, #tpu.memory_space<vmem>>, %arg11: memref<128x64xf32, #tpu.memory_space<vmem>>, %arg12: memref<1x64xf32, #tpu.memory_space<vmem>>, %arg13: memref<64x128xf32, #tpu.memory_space<vmem>>, %arg14: memref<1x128xf32, #tpu.memory_space<vmem>>, %arg15: memref<8x128xf32, #tpu.memory_space<vmem>>, %arg16: memref<8x128xf32, #tpu.memory_space<vmem>>) attributes {dimension_semantics = [#tpu.dimension_semantics<parallel>], iteration_bounds = array<i64: 1>, scalar_prefetch = 0 : i64, scratch_operands = 0 : i64, tpu.core_type = #tpu.core_type<tc>, window_params = [{transform_indices = @transform_0, window_bounds = array<i64: 8, 26>}, {transform_indices = @transform_1, window_bounds = array<i64: 8, 5>}, {pipeline_mode = #tpu.pipeline_mode<synchronous>, transform_indices = @transform_2, window_bounds = array<i64: 26, 64>}, {pipeline_mode = #tpu.pipeline_mode<synchronous>, transform_indices = @transform_3, window_bounds = array<i64: 1, 64>}, {pipeline_mode = #tpu.pipeline_mode<synchronous>, transform_indices = @transform_4, window_bounds = array<i64: 64, 128>}, {pipeline_mode = #tpu.pipeline_mode<synchronous>, transform_indices = @transform_5, window_bounds = array<i64: 1, 128>}, {pipeline_mode = #tpu.pipeline_mode<synchronous>, transform_indices = @transform_6, window_bounds = array<i64: 128, 128>}, {pipeline_mode = #tpu.pipeline_mode<synchronous>, transform_indices = @transform_7, window_bounds = array<i64: 1, 128>}, {pipeline_mode = #tpu.pipeline_mode<synchronous>, transform_indices = @transform_8, window_bounds = array<i64: 5, 128>}, {pipeline_mode = #tpu.pipeline_mode<synchronous>, transform_indices = @transform_9, window_bounds = array<i64: 1, 128>}, {pipeline_mode = #tpu.pipeline_mode<synchronous>, transform_indices = @transform_10, window_bounds = array<i64: 128, 64>}, {pipeline_mode = #tpu.pipeline_mode<synchronous>, transform_indices = @transform_11, window_bounds = array<i64: 1, 64>}, {pipeline_mode = #tpu.pipeline_mode<synchronous>, transform_indices = @transform_12, window_bounds = array<i64: 64, 128>}, {pipeline_mode = #tpu.pipeline_mode<synchronous>, transform_indices = @transform_13, window_bounds = array<i64: 1, 128>}, {transform_indices = @transform_14, window_bounds = array<i64: 8, 128>}, {transform_indices = @transform_15, window_bounds = array<i64: 8, 128>}]} {
    %c0 = arith.constant 0 : index
    %c0_0 = arith.constant 0 : index
    %0 = vector.load %arg1[%c0, %c0_0] : memref<8x26xf32, #tpu.memory_space<vmem>>, vector<8x26xf32>
    %c0_1 = arith.constant 0 : index
    %c0_2 = arith.constant 0 : index
    %1 = vector.load %arg3[%c0_1, %c0_2] : memref<26x64xf32, #tpu.memory_space<vmem>>, vector<26x64xf32>
    %cst = arith.constant dense<0.000000e+00> : vector<8x64xf32>
    %2 = tpu.matmul %0, %1, %cst {dimension_numbers = #tpu.dot_dimension_numbers<[1], [0], [0], [1], [0, 0, 1, 1], [], []>} : vector<8x26xf32>, vector<26x64xf32>, vector<8x64xf32> -> vector<8x64xf32>
    %c0_3 = arith.constant 0 : index
    %c0_4 = arith.constant 0 : index
    %3 = vector.load %arg4[%c0_3, %c0_4] : memref<1x64xf32, #tpu.memory_space<vmem>>, vector<1x64xf32>
    %4 = vector.broadcast %3 : vector<1x64xf32> to vector<8x64xf32>
    %5 = arith.addf %2, %4 : vector<8x64xf32>
    %cst_5 = arith.constant 0.000000e+00 : f32
    %6 = vector.broadcast %cst_5 : f32 to vector<8x64xf32>
    %7 = arith.maximumf %5, %6 : vector<8x64xf32>
    %c0_6 = arith.constant 0 : index
    %c0_7 = arith.constant 0 : index
    %8 = vector.load %arg5[%c0_6, %c0_7] : memref<64x128xf32, #tpu.memory_space<vmem>>, vector<64x128xf32>
    %cst_8 = arith.constant dense<0.000000e+00> : vector<8x128xf32>
    %9 = tpu.matmul %7, %8, %cst_8 {dimension_numbers = #tpu.dot_dimension_numbers<[1], [0], [0], [1], [0, 0, 1, 1], [], []>} : vector<8x64xf32>, vector<64x128xf32>, vector<8x128xf32> -> vector<8x128xf32>
    %c0_9 = arith.constant 0 : index
    %c0_10 = arith.constant 0 : index
    %10 = vector.load %arg6[%c0_9, %c0_10] : memref<1x128xf32, #tpu.memory_space<vmem>>, vector<1x128xf32>
    %11 = vector.broadcast %10 : vector<1x128xf32> to vector<8x128xf32>
    %12 = arith.addf %9, %11 : vector<8x128xf32>
    %cst_11 = arith.constant 0.000000e+00 : f32
    %13 = vector.broadcast %cst_11 : f32 to vector<8x128xf32>
    %14 = arith.maximumf %12, %13 : vector<8x128xf32>
    %c0_12 = arith.constant 0 : index
    %c0_13 = arith.constant 0 : index
    %15 = vector.load %arg7[%c0_12, %c0_13] : memref<128x128xf32, #tpu.memory_space<vmem>>, vector<128x128xf32>
    %cst_14 = arith.constant dense<0.000000e+00> : vector<8x128xf32>
    %16 = tpu.matmul %14, %15, %cst_14 {dimension_numbers = #tpu.dot_dimension_numbers<[1], [0], [0], [1], [0, 0, 1, 1], [], []>} : vector<8x128xf32>, vector<128x128xf32>, vector<8x128xf32> -> vector<8x128xf32>
    %c0_15 = arith.constant 0 : index
    %c0_16 = arith.constant 0 : index
    %17 = vector.load %arg8[%c0_15, %c0_16] : memref<1x128xf32, #tpu.memory_space<vmem>>, vector<1x128xf32>
    %18 = vector.broadcast %17 : vector<1x128xf32> to vector<8x128xf32>
    %19 = arith.addf %16, %18 : vector<8x128xf32>
    %c0_17 = arith.constant 0 : index
    %c0_18 = arith.constant 0 : index
    %20 = vector.load %arg15[%c0_17, %c0_18] : memref<8x128xf32, #tpu.memory_space<vmem>>, vector<8x128xf32>
    tpu.vector_store %arg15[%c0_17, %c0_18], %19 {strides = array<i32>} : memref<8x128xf32, #tpu.memory_space<vmem>>, vector<8x128xf32>,
    %21 = vector.extract_strided_slice %19 {offsets = [0, 0], sizes = [8, 5], strides = [1, 1]} : vector<8x128xf32> to vector<8x5xf32>
    %22 = vector.extract_strided_slice %19 {offsets = [0, 5], sizes = [8, 5], strides = [1, 1]} : vector<8x128xf32> to vector<8x5xf32>
    %c0_19 = arith.constant 0 : index
    %c0_20 = arith.constant 0 : index
    %23 = vector.load %arg2[%c0_19, %c0_20] : memref<8x5xf32, #tpu.memory_space<vmem>>, vector<8x5xf32>
    %cst_21 = arith.constant 5.000000e-01 : f32
    %24 = vector.broadcast %cst_21 : f32 to vector<8x5xf32>
    %25 = arith.mulf %24, %22 : vector<8x5xf32>
    %26 = math.exp %25 : vector<8x5xf32>
    %27 = arith.mulf %23, %26 : vector<8x5xf32>
    %28 = arith.addf %27, %21 : vector<8x5xf32>
    %c0_22 = arith.constant 0 : index
    %c0_23 = arith.constant 0 : index
    %29 = vector.load %arg9[%c0_22, %c0_23] : memref<5x128xf32, #tpu.memory_space<vmem>>, vector<5x128xf32>
    %cst_24 = arith.constant dense<0.000000e+00> : vector<8x128xf32>
    %30 = tpu.matmul %28, %29, %cst_24 {dimension_numbers = #tpu.dot_dimension_numbers<[1], [0], [0], [1], [0, 0, 1, 1], [], []>} : vector<8x5xf32>, vector<5x128xf32>, vector<8x128xf32> -> vector<8x128xf32>
    %c0_25 = arith.constant 0 : index
    %c0_26 = arith.constant 0 : index
    %31 = vector.load %arg10[%c0_25, %c0_26] : memref<1x128xf32, #tpu.memory_space<vmem>>, vector<1x128xf32>
    %32 = vector.broadcast %31 : vector<1x128xf32> to vector<8x128xf32>
    %33 = arith.addf %30, %32 : vector<8x128xf32>
    %cst_27 = arith.constant 0.000000e+00 : f32
    %34 = vector.broadcast %cst_27 : f32 to vector<8x128xf32>
    %35 = arith.maximumf %33, %34 : vector<8x128xf32>
    %c0_28 = arith.constant 0 : index
    %c0_29 = arith.constant 0 : index
    %36 = vector.load %arg11[%c0_28, %c0_29] : memref<128x64xf32, #tpu.memory_space<vmem>>, vector<128x64xf32>
    %cst_30 = arith.constant dense<0.000000e+00> : vector<8x64xf32>
    %37 = tpu.matmul %35, %36, %cst_30 {dimension_numbers = #tpu.dot_dimension_numbers<[1], [0], [0], [1], [0, 0, 1, 1], [], []>} : vector<8x128xf32>, vector<128x64xf32>, vector<8x64xf32> -> vector<8x64xf32>
    %c0_31 = arith.constant 0 : index
    %c0_32 = arith.constant 0 : index
    %38 = vector.load %arg12[%c0_31, %c0_32] : memref<1x64xf32, #tpu.memory_space<vmem>>, vector<1x64xf32>
    %39 = vector.broadcast %38 : vector<1x64xf32> to vector<8x64xf32>
    %40 = arith.addf %37, %39 : vector<8x64xf32>
    %cst_33 = arith.constant 0.000000e+00 : f32
    %41 = vector.broadcast %cst_33 : f32 to vector<8x64xf32>
    %42 = arith.maximumf %40, %41 : vector<8x64xf32>
    %c0_34 = arith.constant 0 : index
    %c0_35 = arith.constant 0 : index
    %43 = vector.load %arg13[%c0_34, %c0_35] : memref<64x128xf32, #tpu.memory_space<vmem>>, vector<64x128xf32>
    %cst_36 = arith.constant dense<0.000000e+00> : vector<8x128xf32>
    %44 = tpu.matmul %42, %43, %cst_36 {dimension_numbers = #tpu.dot_dimension_numbers<[1], [0], [0], [1], [0, 0, 1, 1], [], []>} : vector<8x64xf32>, vector<64x128xf32>, vector<8x128xf32> -> vector<8x128xf32>
    %c0_37 = arith.constant 0 : index
    %c0_38 = arith.constant 0 : index
    %45 = vector.load %arg14[%c0_37, %c0_38] : memref<1x128xf32, #tpu.memory_space<vmem>>, vector<1x128xf32>
    %46 = vector.broadcast %45 : vector<1x128xf32> to vector<8x128xf32>
    %47 = arith.addf %44, %46 : vector<8x128xf32>
    %cst_39 = arith.constant 0.000000e+00 : f32
    %48 = vector.broadcast %cst_39 : f32 to vector<8x128xf32>
    %49 = arith.maximumf %47, %48 : vector<8x128xf32>
    %c0_40 = arith.constant 0 : index
    %c0_41 = arith.constant 0 : index
    %50 = vector.load %arg16[%c0_40, %c0_41] : memref<8x128xf32, #tpu.memory_space<vmem>>, vector<8x128xf32>
    tpu.vector_store %arg16[%c0_40, %c0_41], %49 {strides = array<i32>} : memref<8x128xf32, #tpu.memory_space<vmem>>, vector<8x128xf32>,
    return
  }
  func.func @transform_0(%arg0: i32) -> (i32, i32) {
    %c0_i32 = arith.constant 0 : i32
    %c0_i32_0 = arith.constant 0 : i32
    return %arg0, %c0_i32 : i32, i32
  }
  func.func @transform_1(%arg0: i32) -> (i32, i32) {
    %c0_i32 = arith.constant 0 : i32
    %c0_i32_0 = arith.constant 0 : i32
    return %arg0, %c0_i32 : i32, i32
  }
  func.func @transform_2(%arg0: i32) -> (i32, i32) {
    %c0_i32 = arith.constant 0 : i32
    %c0_i32_0 = arith.constant 0 : i32
    %c0_i32_1 = arith.constant 0 : i32
    return %c0_i32, %c0_i32_0 : i32, i32
  }
  func.func @transform_3(%arg0: i32) -> (i32, i32) {
    %c0_i32 = arith.constant 0 : i32
    %c0_i32_0 = arith.constant 0 : i32
    %c0_i32_1 = arith.constant 0 : i32
    return %c0_i32, %c0_i32_0 : i32, i32
  }
  func.func @transform_4(%arg0: i32) -> (i32, i32) {
    %c0_i32 = arith.constant 0 : i32
    %c0_i32_0 = arith.constant 0 : i32
    %c0_i32_1 = arith.constant 0 : i32
    return %c0_i32, %c0_i32_0 : i32, i32
  }
  func.func @transform_5(%arg0: i32) -> (i32, i32) {
    %c0_i32 = arith.constant 0 : i32
    %c0_i32_0 = arith.constant 0 : i32
    %c0_i32_1 = arith.constant 0 : i32
    return %c0_i32, %c0_i32_0 : i32, i32
  }
  func.func @transform_6(%arg0: i32) -> (i32, i32) {
    %c0_i32 = arith.constant 0 : i32
    %c0_i32_0 = arith.constant 0 : i32
    %c0_i32_1 = arith.constant 0 : i32
    return %c0_i32, %c0_i32_0 : i32, i32
  }
  func.func @transform_7(%arg0: i32) -> (i32, i32) {
    %c0_i32 = arith.constant 0 : i32
    %c0_i32_0 = arith.constant 0 : i32
    %c0_i32_1 = arith.constant 0 : i32
    return %c0_i32, %c0_i32_0 : i32, i32
  }
  func.func @transform_8(%arg0: i32) -> (i32, i32) {
    %c0_i32 = arith.constant 0 : i32
    %c0_i32_0 = arith.constant 0 : i32
    %c0_i32_1 = arith.constant 0 : i32
    return %c0_i32, %c0_i32_0 : i32, i32
  }
  func.func @transform_9(%arg0: i32) -> (i32, i32) {
    %c0_i32 = arith.constant 0 : i32
    %c0_i32_0 = arith.constant 0 : i32
    %c0_i32_1 = arith.constant 0 : i32
    return %c0_i32, %c0_i32_0 : i32, i32
  }
  func.func @transform_10(%arg0: i32) -> (i32, i32) {
    %c0_i32 = arith.constant 0 : i32
    %c0_i32_0 = arith.constant 0 : i32
    %c0_i32_1 = arith.constant 0 : i32
    return %c0_i32, %c0_i32_0 : i32, i32
  }
  func.func @transform_11(%arg0: i32) -> (i32, i32) {
    %c0_i32 = arith.constant 0 : i32
    %c0_i32_0 = arith.constant 0 : i32
    %c0_i32_1 = arith.constant 0 : i32
    return %c0_i32, %c0_i32_0 : i32, i32
  }
  func.func @transform_12(%arg0: i32) -> (i32, i32) {
    %c0_i32 = arith.constant 0 : i32
    %c0_i32_0 = arith.constant 0 : i32
    %c0_i32_1 = arith.constant 0 : i32
    return %c0_i32, %c0_i32_0 : i32, i32
  }
  func.func @transform_13(%arg0: i32) -> (i32, i32) {
    %c0_i32 = arith.constant 0 : i32
    %c0_i32_0 = arith.constant 0 : i32
    %c0_i32_1 = arith.constant 0 : i32
    return %c0_i32, %c0_i32_0 : i32, i32
  }
  func.func @transform_14(%arg0: i32) -> (i32, i32) {
    %c0_i32 = arith.constant 0 : i32
    %c0_i32_0 = arith.constant 0 : i32
    return %arg0, %c0_i32 : i32, i32
  }
  func.func @transform_15(%arg0: i32) -> (i32, i32) {
    %c0_i32 = arith.constant 0 : i32
    %c0_i32_0 = arith.constant 0 : i32
    return %arg0, %c0_i32 : i32, i32
  }
}

</mosaic_0001>

<bundles_post_ra>
// kernel: tpu_custom_call.1
= control target key start
LH: loop header
LB: loop body
LE: loop exit
PB: predicated region body
PF: predicated region fallthrough
CT: control target
= control target key end

     0   :  { %21 = vsyncpa [#allocation3], 0  ;;  %s1383_s0 = inlined_call_operand.vmem [shape: f32[8,26], index: 0, kind: input, shape index: {}]   ;;  %s1384_s1 = inlined_call_operand.hbm [shape: f32[8,5], index: 1, kind: input, shape index: {}]   ;;  %s1385_s2 = inlined_call_operand.hbm [shape: f32[26,64], index: 2, kind: input, shape index: {}]   ;;  %s1386_s3 = inlined_call_operand.vmem [shape: f32[1,64], index: 3, kind: input, shape index: {}]   ;;  %s1387_s4 = inlined_call_operand.vmem [shape: f32[64,128], index: 4, kind: input, shape index: {}]   ;;  %s1388_s5 = inlined_call_operand.vmem [shape: f32[1,128], index: 5, kind: input, shape index: {}]   ;;  %s1389_s6 = inlined_call_operand.vmem [shape: f32[128,128], index: 6, kind: input, shape index: {}]   ;;  %s1390_s7 = inlined_call_operand.hbm [shape: f32[1,128], index: 7, kind: input, shape index: {}]   ;;  %s1391_s8 = inlined_call_operand.hbm [shape: f32[5,128], index: 8, kind: input, shape index: {}]   ;;  %s1392_s9 = inlined_call_operand.vmem [shape: f32[1,128], index: 9, kind: input, shape index: {}]   ;;  %s1393_s10 = inlined_call_operand.vmem [shape: f32[128,64], index: 10, kind: input, shape index: {}]   ;;  %s1394_s11 = inlined_call_operand.vmem [shape: f32[1,64], index: 11, kind: input, shape index: {}]   ;;  %s1395_s12 = inlined_call_operand.hbm [shape: f32[64,128], index: 12, kind: input, shape index: {}]   ;;  %s1396_s13 = inlined_call_operand.vmem [shape: f32[1,128], index: 13, kind: input, shape index: {}]   ;;  %s1397_s14 = inlined_call_operand.hbm [shape: f32[8,128], index: 14, kind: output, shape index: {0}]   ;;  %s1398_s15 = inlined_call_operand.hbm [shape: f32[8,128], index: 15, kind: output, shape index: {1}]  }
   0x1   :  { %22 = vsyncpa [#allocation6], 0 }
   0x2   :  { %23 = vsyncpa [#allocation9], 0 }
   0x3   :  { %24 = vsyncpa [#allocation4], 0 }
   0x4   :  { %25 = vsyncpa [#allocation13], 0  ;;  %s1059_s18 = smov [#allocation5]  }
   0x5   :  { %s43_s19 = sshll.u32 %s1059_s18, 4  ;;  %s44_s19 = int_to_ptr.vmem [resolvable:$true] %s43_s19 }
   0x6   :  { %s917_s20 = scalar_lea.vmem %s44_s19, 512  ;;  %p922_p1 = scmp.lt.s32.totalorder %s44_s19, %s44_s19 }
   0x7   :  { %p918_p0 = scmp.ne.s32.totalorder %s44_s19, %s917_s20  ;;  %p923_p2 = scmp.lt.s32.totalorder %s917_s20, %s917_s20 }
   0x9   :  { %p924_p3 = por %p923_p2, %p922_p1 }
   0xb   :  { %p925_p4 = pnand %p924_p3, %p918_p0 }
   0xd   :  { %928 = shalt.err (!%p925_p4)
}
   0xe   :  { %s1060_s21 = smov 128   ;;  %s1061_s22 = smov 8  }
   0xf   :  { %49 = dma.hbm_to_vmem [thread:$0]  %s1385_s2, 512, %s44_s19, [#allocation6], %s1060_s21, %s1060_s21, %s1061_s22  }
  0x10   :  { %s1062_s25 = smov [#allocation8]   ;;  %s1063_s27 = smov [#allocation2]  }
  0x11   :  { %s74_s26 = sshll.u32 %s1062_s25, 4  ;;  %s34_s28 = sshll.u32 %s1063_s27, 4  ;;  %s75_s26 = int_to_ptr.vmem [resolvable:$true] %s74_s26  ;;  %s35_s28 = int_to_ptr.vmem [resolvable:$true] %s34_s28 }
  0x12   :  { %s937_s29 = scalar_lea.vmem %s75_s26, 128  ;;  %p942_p6 = scmp.lt.s32.totalorder %s75_s26, %s75_s26 }
  0x13   :  { %p938_p5 = scmp.ne.s32.totalorder %s75_s26, %s937_s29  ;;  %p943_p7 = scmp.lt.s32.totalorder %s937_s29, %s937_s29 }
  0x15   :  { %p944_p8 = por %p943_p7, %p942_p6 }
  0x17   :  { %p945_p9 = pnand %p944_p8, %p938_p5 }
  0x19   :  { %948 = shalt.err (!%p945_p9)
}
  0x1a   :  { %77 = dma.hbm_to_vmem [thread:$0]  %s1391_s8, 128, %s75_s26, [#allocation9]  }
  0x1b   :  { %s957_s17 = scalar_lea.vmem %s35_s28, 128  ;;  %p962_p11 = scmp.lt.s32.totalorder %s35_s28, %s35_s28 }
  0x1c   :  { %p958_p10 = scmp.ne.s32.totalorder %s35_s28, %s957_s17  ;;  %p963_p12 = scmp.lt.s32.totalorder %s957_s17, %s957_s17 }
  0x1e   :  { %p964_p13 = por %p963_p12, %p962_p11 }
  0x20   :  { %p965_p0 = pnand %p964_p13, %p958_p10 }
  0x22   :  { %968 = shalt.err (!%p965_p0)
}
  0x23   :  { %37 = dma.hbm_to_vmem [thread:$0]  %s1384_s1, 128, %s35_s28, [#allocation3]  }
  0x24   :  { %s1064_s19 = smov [#allocation7]   ;;  %s1065_s23 = smov [#allocation10]  }
  0x25   :  { %s64_s20 = sshll.u32 %s1064_s19, 4  ;;  %s89_s24 = sshll.u32 %s1065_s23, 4  ;;  %s65_s20 = int_to_ptr.vmem [resolvable:$true] %s64_s20  ;;  %s90_s24 = int_to_ptr.vmem [resolvable:$true] %s89_s24 }
  0x26   :  { %s977_s25 = scalar_lea.vmem %s65_s20, 16  ;;  %s981_s8 = scalar_lea.vmem %s65_s20, 32 }
  0x27   :  { %p978_p1 = scmp.ne.s32.totalorder %s65_s20, %s977_s25  ;;  %p982_p2 = scmp.lt.s32.totalorder %s65_s20, %s65_s20 }
  0x28   :  { %p983_p3 = scmp.lt.s32.totalorder %s981_s8, %s977_s25 }
  0x2a   :  { %p984_p4 = por %p983_p3, %p982_p2 }
  0x2c   :  { %p985_p5 = pnand %p984_p4, %p978_p1 }
  0x2e   :  { %988 = shalt.err (!%p985_p5)
}
  0x2f   :  { %67 = dma.hbm_to_vmem [thread:$0]  %s1390_s7, 16, %s65_s20, [#allocation6]  }
  0x30   :  { %s997_s29 = scalar_lea.vmem %s90_s24, 1024  ;;  %p1002_p7 = scmp.lt.s32.totalorder %s90_s24, %s90_s24 }
  0x31   :  { %p998_p6 = scmp.ne.s32.totalorder %s90_s24, %s997_s29  ;;  %p1003_p8 = scmp.lt.s32.totalorder %s997_s29, %s997_s29 }
  0x33   :  { %p1004_p9 = por %p1003_p8, %p1002_p7 }
  0x35   :  { %p1005_p10 = pnand %p1004_p9, %p998_p6 }
  0x37   :  { %1008 = shalt.err (!%p1005_p10)
}
  0x38   :  { %95 = dma.hbm_to_vmem [thread:$0]  %s1395_s12, 1024, %s90_s24, [#allocation9], %s1060_s21, %s1060_s21, %s1061_s22  }
  0x39   :  { %1049 = dma.done.wait [#allocation3], 128  }
  0x3a   :  { %1050 = vsyncadd [#allocation3], 4294967168 }
  0x3b   :  { %1051 = dma.done.wait [#allocation6], 528  }
  0x3c   :  { %1052 = vsyncadd [#allocation6], 4294966768 }
  0x3d   :  { %1053 = dma.done.wait [#allocation9], 1152  }
  0x3e   :  { %1054 = vsyncadd [#allocation9], 4294966144  ;;  %v1066_v0 = vmov 0.0   ;;  %vm1067_vm0 = vmmov 0   ;;  %vm129_vm1 = vcmask 1041408   ;;  %v116_v2 = vld [vmem:[#allocation5 + $0x10] sm:$0xff] }
  0x3f   :  { %771 = vmatprep.subr.mxu0 %v1066_v0  ;;  %779 = vmatprep.mubr.msk.f32.mxu0 %vm1067_vm0, %v1066_v0  ;;  %v117_v1 = vld [vmem:[#allocation5 + $0x18] sm:$0x3]  ;;  %v211_v3 = vld [vmem:[%s1387_s4 + $0x38] sm:$0xff]  ;;  %v115_v4 = vld [vmem:[#allocation5 + $0x8] sm:$0xff]  ;;  %vm125_vm2 = vcmask 211968   ;;  %vm219_vm3 = vcmask 523264  }
  0x40   :  { %782 = vmatprep.subr.mxu1 %v1066_v0  ;;  %798 = vmatprep.mubr.msk.f32.mxu1 %vm1067_vm0, %v1066_v0  ;;  %v210_v5 = vld [vmem:[%s1387_s4 + $0x30] sm:$0xff]  ;;  %v209_v6 = vld [vmem:[%s1387_s4 + $0x28] sm:$0xff]  ;;  %v113_v8 = vld [vmem:[%s1383_s0] sm:$0xff]  ;;  %vm410_vm4 = vcmask 1044480   ;;  %vm406_vm5 = vcmask 39936  }
  0x41   :  { %772 = vmatpush3.msk.msra.mxu0 %vm129_vm1, %v117_v1  ;;  %783 = vmatpush3.msra.mxu1 %v211_v3  ;;  %v114_v7 = vld [vmem:[#allocation5] sm:$0xff]  ;;  %v208_v9 = vld [vmem:[%s1387_s4 + $0x20] sm:$0xff]  ;;  %v207_v10 = vld [vmem:[%s1387_s4 + $0x18] sm:$0xff] }
  0x42   :  { %773 = vmatprep.subr.mxu0 %v1066_v0  ;;  %784 = vmatprep.subr.mxu1 %v1066_v0  ;;  %v206_v11 = vld [vmem:[%s1387_s4 + $0x10] sm:$0xff]  ;;  %v205_v12 = vld [vmem:[%s1387_s4 + $0x8] sm:$0xff]  ;;  %v204_v13 = vld [vmem:[%s1387_s4] sm:$0xff] }
  0x43   :  { %774 = vmatpush3.msra.mxu0 %v116_v2  ;;  %785 = vmatpush3.msra.mxu1 %v210_v5  ;;  %v309_v14 = vld [vmem:[%s1389_s6 + $0x78] sm:$0xff]  ;;  %v308_v15 = vld [vmem:[%s1389_s6 + $0x70] sm:$0xff]  ;;  %v307_v16 = vld [vmem:[%s1389_s6 + $0x68] sm:$0xff] }
  0x44   :  { %775 = vmatprep.subr.mxu0 %v1066_v0  ;;  %786 = vmatprep.subr.mxu1 %v1066_v0  ;;  %v306_v17 = vld [vmem:[%s1389_s6 + $0x60] sm:$0xff]  ;;  %v305_v18 = vld [vmem:[%s1389_s6 + $0x58] sm:$0xff]  ;;  %v304_v19 = vld [vmem:[%s1389_s6 + $0x50] sm:$0xff] }
  0x45   :  { %776 = vmatpush3.msra.mxu0 %v115_v4  ;;  %787 = vmatpush3.msra.mxu1 %v209_v6  ;;  %v303_v20 = vld [vmem:[%s1389_s6 + $0x48] sm:$0xff]  ;;  %v302_v21 = vld [vmem:[%s1389_s6 + $0x40] sm:$0xff]  ;;  %v301_v22 = vld [vmem:[%s1389_s6 + $0x38] sm:$0xff] }
  0x46   :  { %777 = vmatprep.subr.mxu0 %v1066_v0  ;;  %788 = vmatprep.subr.mxu1 %v1066_v0  ;;  %v300_v23 = vld [vmem:[%s1389_s6 + $0x30] sm:$0xff]  ;;  %v299_v24 = vld [vmem:[%s1389_s6 + $0x28] sm:$0xff]  ;;  %v298_v25 = vld [vmem:[%s1389_s6 + $0x20] sm:$0xff] }
  0x47   :  { %778 = vmatpush3.msra.mxu0 %v114_v7  ;;  %789 = vmatpush3.msra.mxu1 %v208_v9  ;;  %v297_v26 = vld [vmem:[%s1389_s6 + $0x18] sm:$0xff]  ;;  %v700_v27 = vld [vmem:[%s1386_s3] ss:$0 sm:$0xff]  ;;  %v296_v32 = vld [vmem:[%s1389_s6 + $0x10] sm:$0xff] }
  0x48   :  { %780 = vmatmul.mubr.msk.f32.vlgmr.msra.gmra.mxu0 %vm125_vm2, %v113_v8  ;;  %790 = vmatprep.subr.mxu1 %v1066_v0  ;;  %v295_v33 = vld [vmem:[%s1389_s6 + $0x8] sm:$0xff]  ;;  %v294_v34 = vld [vmem:[%s1389_s6] sm:$0xff]  ;;  %v500_v52 = vld [vmem:[%s1393_s10 + $0x78] sm:$0xff] }
  0x49   :  { %801 = vmatprep.subr.mxu0 %v1066_v0  ;;  %791 = vmatpush3.msra.mxu1 %v207_v10  ;;  %v703_v35 = vld [vmem:[%s1388_s5] ss:$0 sm:$0xff]  ;;  %v705_v40 = vld [vmem:[#allocation7] ss:$0 sm:$0xff]  ;;  %v398_v46 = vld [vmem:[#allocation8] sm:$0x1f] }
  0x4a   :  { %833 = vmatprep.mubr.msk.f32.mxu0 %vm1067_vm0, %v1066_v0  ;;  %792 = vmatprep.subr.mxu1 %v1066_v0  ;;  %s1068_s5 = smov 123   ;;  %v388_v48 = vld [vmem:[#allocation2] sm:$0xff]  ;;  %v499_v53 = vld [vmem:[%s1393_s10 + $0x70] sm:$0xff]  ;;  %v498_v54 = vld [vmem:[%s1393_s10 + $0x68] sm:$0xff] }
  0x4b   :  { %793 = vmatpush3.msra.mxu1 %v206_v11  ;;  %802 = vmatpush3.msra.mxu0 %v309_v14  ;;  %v497_v55 = vld [vmem:[%s1393_s10 + $0x60] sm:$0xff]  ;;  %v496_v56 = vld [vmem:[%s1393_s10 + $0x58] sm:$0xff]  ;;  %v495_v57 = vld [vmem:[%s1393_s10 + $0x50] sm:$0xff] }
  0x4c   :  { %794 = vmatprep.subr.mxu1 %v1066_v0  ;;  %803 = vmatprep.subr.mxu0 %v1066_v0  ;;  %v494_v58 = vld [vmem:[%s1393_s10 + $0x48] sm:$0xff]  ;;  %v493_v59 = vld [vmem:[%s1393_s10 + $0x40] sm:$0xff]  ;;  %v492_v60 = vld [vmem:[%s1393_s10 + $0x38] sm:$0xff] }
  0x4d   :  { %795 = vmatpush3.msra.mxu1 %v205_v12  ;;  %804 = vmatpush3.msra.mxu0 %v308_v15  ;;  %v491_v61 = vld [vmem:[%s1393_s10 + $0x30] sm:$0xff]  ;;  %v490_v62 = vld [vmem:[%s1393_s10 + $0x28] sm:$0xff]  ;;  %v489_v63 = vld [vmem:[%s1393_s10 + $0x20] sm:$0xff] }
  0x4e   :  { %796 = vmatprep.subr.mxu1 %v1066_v0  ;;  %805 = vmatprep.subr.mxu0 %v1066_v0  ;;  %v488_v1 = vld [vmem:[%s1393_s10 + $0x18] sm:$0xff]  ;;  %v487_v2 = vld [vmem:[%s1393_s10 + $0x10] sm:$0xff]  ;;  %v486_v3 = vld [vmem:[%s1393_s10 + $0x8] sm:$0xff] }
  0x4f   :  { %797 = vmatpush3.msra.mxu1 %v204_v13  ;;  %806 = vmatpush3.msra.mxu0 %v307_v16  ;;  %v485_v4 = vld [vmem:[%s1393_s10] sm:$0xff]  ;;  %v586_v5 = vld [vmem:[#allocation10 + $0x38] sm:$0xff]  ;;  %v583_v8 = vld [vmem:[#allocation10 + $0x20] sm:$0xff] }
  0x50   :  { %836 = vmatprep.subr.mxu1 %v1066_v0  ;;  %807 = vmatprep.subr.mxu0 %v1066_v0  ;;  %v585_v6 = vld [vmem:[#allocation10 + $0x30] sm:$0xff]  ;;  %v584_v7 = vld [vmem:[#allocation10 + $0x28] sm:$0xff]  ;;  %v582_v9 = vld [vmem:[#allocation10 + $0x18] sm:$0xff] }
  0x51   :  { %808 = vmatpush3.msra.mxu0 %v306_v17  ;;  %v706_v10 = vld [vmem:[%s1392_s9] ss:$0 sm:$0xff]  ;;  %v581_v15 = vld [vmem:[#allocation10 + $0x10] sm:$0xff]  ;;  %v579_v17 = vld [vmem:[#allocation10] sm:$0xff]  ;;  %s1069_s9 = smov [#allocation11]  }
  0x52   :  { %809 = vmatprep.subr.mxu0 %v1066_v0  ;;  %v580_v16 = vld [vmem:[#allocation10 + $0x8] sm:$0xff]  ;;  %s675_s29 = sshll.u32 %s1069_s9, 4  ;;  %s676_s29 = int_to_ptr.vmem [resolvable:$true] %s675_s29 }
  0x53   :  { %810 = vmatpush3.msra.mxu0 %v305_v18  ;;  %v709_v18 = vld [vmem:[%s1394_s11] ss:$0 sm:$0xff]  ;;  %s1009_s1 = scalar_lea.vmem %s676_s29, 128  ;;  %p1014_p12 = scmp.lt.s32.totalorder %s676_s29, %s676_s29 }
  0x54   :  { %811 = vmatprep.subr.mxu0 %v1066_v0  ;;  %p1010_p11 = scmp.ne.s32.totalorder %s676_s29, %s1009_s1  ;;  %p1015_p13 = scmp.lt.s32.totalorder %s1009_s1, %s1009_s1 }
  0x55   :  { %812 = vmatpush3.msra.mxu0 %v304_v19 }
  0x56   :  { %813 = vmatprep.subr.mxu0 %v1066_v0  ;;  %p1016_p0 = por %p1015_p13, %p1014_p12 }
  0x57   :  { %814 = vmatpush3.msra.mxu0 %v303_v20 }
  0x58   :  { %815 = vmatprep.subr.mxu0 %v1066_v0  ;;  %p1017_p1 = pnand %p1016_p0, %p1010_p11 }
  0x59   :  { %816 = vmatpush3.msra.mxu0 %v302_v21 }
  0x5a   :  { %817 = vmatprep.subr.mxu0 %v1066_v0 }
  0x5b   :  { %818 = vmatpush3.msra.mxu0 %v301_v22 }
  0x5c   :  { %819 = vmatprep.subr.mxu0 %v1066_v0 }
  0x5d   :  { %820 = vmatpush3.msra.mxu0 %v300_v23 }
  0x5e   :  { %821 = vmatprep.subr.mxu0 %v1066_v0 }
  0x5f   :  { %822 = vmatpush3.msra.mxu0 %v299_v24 }
  0x60   :  { %823 = vmatprep.subr.mxu0 %v1066_v0 }
  0x61   :  { %824 = vmatpush3.msra.mxu0 %v298_v25 }
  0x62   :  { %825 = vmatprep.subr.mxu0 %v1066_v0 }
  0x63   :  { %826 = vmatpush3.msra.mxu0 %v297_v26 }
  0x64   :  { %827 = vmatprep.subr.mxu0 %v1066_v0 }
  0x65   :  { %828 = vmatpush3.msra.mxu0 %v296_v32 }
  0x66   :  { %829 = vmatprep.subr.mxu0 %v1066_v0 }
  0x67   :  { %830 = vmatpush3.msra.mxu0 %v295_v33 }
  0x68   :  { %831 = vmatprep.subr.mxu0 %v1066_v0 }
  0x69   :  { %832 = vmatpush3.msra.mxu0 %v294_v34 }
  0x6a   :  { %876 = vmatprep.subr.mxu0 %v1066_v0 }
 0x108   :  { %v199_v28 = vpop.f32.mrf.mxu0 }
 0x109   :  { %v200_v29 = vadd.f32 %v700_v27, %v199_v28 }
 0x10a   :  { %v781_v30 = vpop.f32.mrf.mxu0 }
 0x10b   :  { %v203_v31 = vmax.f32 %v200_v29, 0.0 }
 0x10d   :  { %799 = vmatmul.mubr.msk.f32.vlgmr.msra.gmra.mxu1 %vm219_vm3, %v203_v31 }
 0x10e   :  { %838 = vmatprep.mubr.msk.f32.mxu1 %vm1067_vm0, %v1066_v0  ;;  %837 = vmatpush3.msk.msra.mxu1 %vm410_vm4, %v398_v46 }
 0x10f   :  { %841 = vmatprep.subr.mxu1 %v1066_v0 }
 0x1cd   :  { %v289_v36 = vpop.f32.mrf.mxu1 }
 0x1ce   :  { %v290_v37 = vadd.f32 %v703_v35, %v289_v36 }
 0x1cf   :  { %v800_v38 = vpop.f32.mrf.mxu1 }
 0x1d0   :  { %v293_v39 = vmax.f32 %v290_v37, 0.0 }
 0x1d2   :  { %834 = vmatmul.mubr.f32.vlgmr.msra.gmra.mxu0 %v293_v39 }
 0x1d3   :  { %892 = vmatprep.mubr.msk.f32.mxu0 %vm1067_vm0, %v1066_v0  ;;  %877 = vmatpush3.msra.mxu0 %v586_v5 }
 0x1d4   :  { %878 = vmatprep.subr.mxu0 %v1066_v0 }
 0x1d5   :  { %879 = vmatpush3.msra.mxu0 %v585_v6 }
 0x1d6   :  { %880 = vmatprep.subr.mxu0 %v1066_v0 }
 0x1d7   :  { %881 = vmatpush3.msra.mxu0 %v584_v7 }
 0x1d8   :  { %882 = vmatprep.subr.mxu0 %v1066_v0 }
 0x1d9   :  { %883 = vmatpush3.msra.mxu0 %v583_v8 }
 0x1da   :  { %884 = vmatprep.subr.mxu0 %v1066_v0 }
 0x1db   :  { %885 = vmatpush3.msra.mxu0 %v582_v9 }
 0x1dc   :  { %886 = vmatprep.subr.mxu0 %v1066_v0 }
 0x1dd   :  { %887 = vmatpush3.msra.mxu0 %v581_v15 }
 0x1de   :  { %888 = vmatprep.subr.mxu0 %v1066_v0 }
 0x1df   :  { %889 = vmatpush3.msra.mxu0 %v580_v16 }
 0x1e0   :  { %890 = vmatprep.subr.mxu0 %v1066_v0 }
 0x1e1   :  { %891 = vmatpush3.msra.mxu0 %v579_v17 }
 0x292   :  { %v383_v41 = vpop.f32.mrf.mxu0 }
 0x293   :  { %v384_v42 = vadd.f32 %v705_v40, %v383_v41 }
 0x294   :  { %v835_v43 = vpop.f32.mrf.mxu0 }
 0x295   :  { %v389_v44 = vmul.f32 0.5, %v384_v42  ;;  %387 = vst [vmem:[#allocation11] sm:$0xff] %v384_v42 }
 0x297   :  { %v390_v45 = vmul.f32 1.442695, %v389_v44 }
 0x299   :  { %907 = vpow2.f32 %v390_v45 }
 0x2a6   :  { %v908_v47 = vpop.eup %907 }
 0x2a7   :  { %393 = vrot.lane.b32.xlu0 %v908_v47, %s1068_s5 }
 0x319   :  { %v394_v49 = vpop.permute.xlu0 %393 }
 0x31a   :  { %v396_v50 = vmul.f32 %v394_v49, %v388_v48 }
 0x31c   :  { %v397_v51 = vadd.f32 %v396_v50, %v384_v42 }
 0x31e   :  { %839 = vmatmul.mubr.msk.f32.vlgmr.msra.gmra.mxu1 %vm406_vm5, %v397_v51 }
 0x31f   :  { %842 = vmatpush3.msra.mxu1 %v500_v52  ;;  %873 = vmatprep.mubr.msk.f32.mxu1 %vm1067_vm0, %v1066_v0 }
 0x320   :  { %843 = vmatprep.subr.mxu1 %v1066_v0 }
 0x321   :  { %844 = vmatpush3.msra.mxu1 %v499_v53 }
 0x322   :  { %845 = vmatprep.subr.mxu1 %v1066_v0 }
 0x323   :  { %846 = vmatpush3.msra.mxu1 %v498_v54 }
 0x324   :  { %847 = vmatprep.subr.mxu1 %v1066_v0 }
 0x325   :  { %848 = vmatpush3.msra.mxu1 %v497_v55 }
 0x326   :  { %849 = vmatprep.subr.mxu1 %v1066_v0 }
 0x327   :  { %850 = vmatpush3.msra.mxu1 %v496_v56 }
 0x328   :  { %851 = vmatprep.subr.mxu1 %v1066_v0 }
 0x329   :  { %852 = vmatpush3.msra.mxu1 %v495_v57 }
 0x32a   :  { %853 = vmatprep.subr.mxu1 %v1066_v0 }
 0x32b   :  { %854 = vmatpush3.msra.mxu1 %v494_v58 }
 0x32c   :  { %855 = vmatprep.subr.mxu1 %v1066_v0 }
 0x32d   :  { %856 = vmatpush3.msra.mxu1 %v493_v59 }
 0x32e   :  { %857 = vmatprep.subr.mxu1 %v1066_v0 }
 0x32f   :  { %858 = vmatpush3.msra.mxu1 %v492_v60 }
 0x330   :  { %859 = vmatprep.subr.mxu1 %v1066_v0 }
 0x331   :  { %860 = vmatpush3.msra.mxu1 %v491_v61 }
 0x332   :  { %861 = vmatprep.subr.mxu1 %v1066_v0 }
 0x333   :  { %862 = vmatpush3.msra.mxu1 %v490_v62 }
 0x334   :  { %863 = vmatprep.subr.mxu1 %v1066_v0 }
 0x335   :  { %864 = vmatpush3.msra.mxu1 %v489_v63 }
 0x336   :  { %865 = vmatprep.subr.mxu1 %v1066_v0 }
 0x337   :  { %866 = vmatpush3.msra.mxu1 %v488_v1 }
 0x338   :  { %867 = vmatprep.subr.mxu1 %v1066_v0 }
 0x339   :  { %868 = vmatpush3.msra.mxu1 %v487_v2 }
 0x33a   :  { %869 = vmatprep.subr.mxu1 %v1066_v0 }
 0x33b   :  { %870 = vmatpush3.msra.mxu1 %v486_v3 }
 0x33c   :  { %871 = vmatprep.subr.mxu1 %v1066_v0 }
 0x33d   :  { %872 = vmatpush3.msra.mxu1 %v485_v4 }
 0x3de   :  { %v480_v11 = vpop.f32.mrf.mxu1 }
 0x3df   :  { %v481_v12 = vadd.f32 %v706_v10, %v480_v11 }
 0x3e0   :  { %v840_v13 = vpop.f32.mrf.mxu1 }
 0x3e1   :  { %v484_v14 = vmax.f32 %v481_v12, 0.0 }
 0x3e3   :  { %874 = vmatmul.mubr.f32.vlgmr.msra.gmra.mxu1 %v484_v14 }
 0x4a3   :  { %v574_v19 = vpop.f32.mrf.mxu1 }
 0x4a4   :  { %v575_v20 = vadd.f32 %v709_v18, %v574_v19 }
 0x4a5   :  { %v875_v21 = vpop.f32.mrf.mxu1 }
 0x4a6   :  { %v578_v22 = vmax.f32 %v575_v20, 0.0 }
 0x4a8   :  { %893 = vmatmul.mubr.msk.f32.vlgmr.msra.gmra.mxu0 %vm219_vm3, %v578_v22 }
 0x4a9   :  { %1020 = shalt.err (!%p1017_p1)
}
 0x4aa   :  { %678 = dma.vmem_to_hbm [thread:$0]  %s676_s29, 128, %s1397_s14, [#allocation4]   ;;  %v710_v0 = vld [vmem:[%s1396_s13] ss:$0 sm:$0xff] }
 0x4ab   :  { %s1070_s21 = smov [#allocation12]  }
 0x4ac   :  { %s685_s4 = sshll.u32 %s1070_s21, 4  ;;  %s686_s4 = int_to_ptr.vmem [resolvable:$true] %s685_s4 }
 0x4ad   :  { %s1029_s22 = scalar_lea.vmem %s686_s4, 128  ;;  %p1034_p3 = scmp.lt.s32.totalorder %s686_s4, %s686_s4 }
 0x4ae   :  { %p1030_p2 = scmp.ne.s32.totalorder %s686_s4, %s1029_s22  ;;  %p1035_p4 = scmp.lt.s32.totalorder %s1029_s22, %s1029_s22 }
 0x4b0   :  { %p1036_p5 = por %p1035_p4, %p1034_p3 }
 0x4b2   :  { %p1037_p6 = pnand %p1036_p5, %p1030_p2 }
 0x568   :  { %v663_v23 = vpop.f32.mrf.mxu0 }
 0x569   :  { %v664_v24 = vadd.f32 %v710_v0, %v663_v23 }
 0x56a   :  { %v894_v25 = vpop.f32.mrf.mxu0 }
 0x56b   :  { %v667_v26 = vmax.f32 %v664_v24, 0.0 }
 0x56d   :  { %668 = vst [vmem:[#allocation12] sm:$0xff] %v667_v26 }
 0x56e   :  { %1040 = shalt.err (!%p1037_p6)
}
 0x56f   :  { %688 = dma.vmem_to_hbm [thread:$0]  %s686_s4, 128, %s1398_s15, [#allocation13]  }
 0x570   :  { %1055 = dma.done.wait [#allocation4], 128  }
 0x571   :  { %1056 = vsyncadd [#allocation4], 4294967168 }
 0x572   :  { %1057 = dma.done.wait [#allocation13], 128  }
 0x573   :  { %1058 = vsyncadd [#allocation13], 4294967168 }
 0x574   :  { %695 = vsyncpa [#allocation3], 1 }
 0x575   :  { %696 = vsyncpa [#allocation6], 1 }
 0x576   :  { %697 = vsyncpa [#allocation9], 1 }
 0x577   :  { %698 = vsyncpa [#allocation4], 1 }
 0x578   :  { %699 = vsyncpa [#allocation13], 1 }

</bundles_post_ra>
